<compile_context>
chip_gen: v6e
topology: v6e:2x2x1
jax: 0.10.0
libtpu: 0.0.40
codegen_flags: <defaults>
</compile_context>

<pallas_src>
import jax
import jax.numpy as jnp
from jax.experimental import pallas as pl
from jax.experimental.pallas import tpu as pltpu


# ---------------------------------------------------------------------------
# Kernels
# ---------------------------------------------------------------------------

def _q_head(x, a, w1x_ref, w1a_ref, b12_ref, w2_ref, w3_ref, b3_ref):
    """One critic head: relu(fc1([x,a])) -> relu(fc2) -> fc3.

    x, a are already cast to the matmul dtype; bias adds / ReLU / fc3 stay f32.
    """
    # fc1 + ReLU: the feature-axis concat is two MXU dots accumulated in f32.
    h1 = (jnp.dot(x, w1x_ref[...], preferred_element_type=jnp.float32)
          + jnp.dot(a, w1a_ref[...], preferred_element_type=jnp.float32)
          + b12_ref[0:1, :])
    h1 = jnp.maximum(h1, 0.0)

    # fc2 + ReLU
    h2 = (jnp.dot(h1.astype(w2_ref.dtype), w2_ref[...],
                  preferred_element_type=jnp.float32)
          + b12_ref[1:2, :])
    h2 = jnp.maximum(h2, 0.0)

    # fc3: an (tm, H) x (H, 1) matmul would waste 127/128 MXU lanes; do it on
    # the VPU (mul) + XLU (lane reduce).  b3 is an SMEM scalar.
    return jnp.sum(h2 * w3_ref[...], axis=-1, keepdims=True) + b3_ref[0]


def soft_q_kernel(x_ref, a_ref, w1x_ref, w1a_ref, b12_ref, w2_ref, w3_ref,
                  b3_ref, o_ref):
    dt = w1x_ref.dtype
    o_ref[...] = _q_head(x_ref[...].astype(dt), a_ref[...].astype(dt),
                         w1x_ref, w1a_ref, b12_ref, w2_ref, w3_ref, b3_ref)


def twin_soft_q_kernel(x_ref, a_ref,
                       w1x1_ref, w1a1_ref, b121_ref, w21_ref, w31_ref, b31_ref,
                       w1x2_ref, w1a2_ref, b122_ref, w22_ref, w32_ref, b32_ref,
                       q_ref):
    """Fused SAC twin critics: shared x/a load+cast, single (tm, 2) output."""
    dt = w1x1_ref.dtype
    x = x_ref[...].astype(dt)
    a = a_ref[...].astype(dt)
    q_ref[:, 0:1] = _q_head(x, a, w1x1_ref, w1a1_ref, b121_ref, w21_ref,
                            w31_ref, b31_ref)
    q_ref[:, 1:2] = _q_head(x, a, w1x2_ref, w1a2_ref, b122_ref, w22_ref,
                            w32_ref, b32_ref)


# ---------------------------------------------------------------------------
# Parameter handling (pack ONCE per optimizer step, not per forward)
# ---------------------------------------------------------------------------

def init_soft_q_params(key, input_dim, action_dim, hidden_dim):
    """nn.Linear-style init (U[-1/sqrt(fan_in), +]); weights stored [in, out]."""
    def linear_init(k, fan_in, fan_out):
        kw, kb = jax.random.split(k)
        bound = 1.0 / jnp.sqrt(jnp.float32(fan_in))
        w = jax.random.uniform(kw, (fan_in, fan_out), jnp.float32, -bound, bound)
        b = jax.random.uniform(kb, (fan_out,), jnp.float32, -bound, bound)
        return w, b

    k1, k2, k3 = jax.random.split(key, 3)
    w1, b1 = linear_init(k1, input_dim + action_dim, hidden_dim)
    w2, b2 = linear_init(k2, hidden_dim, hidden_dim)
    w3, b3 = linear_init(k3, hidden_dim, 1)
    return (w1, b1, w2, b2, w3, b3)


def pack_params(params, input_dim, compute_dtype=jnp.bfloat16):
    """Repack (w1,b1,w2,b2,w3,b3) into the kernel layout (call once, outside
    the per-forward hot path).

    The hidden axis is zero-padded to a multiple of 128 so the kernel runs
    lane-dense.  Returns (w1x, w1a, b12, w2, w3_row, b3):
      w1x [input_dim, Hp], w1a [action_dim, Hp], w2 [Hp, Hp] -> compute_dtype
      b12 [2, Hp] f32 (fc1/fc2 biases stacked -> one VMEM tile / DMA)
      w3_row [1, Hp] f32 (VPU fc3 path), b3 [1] f32 (SMEM scalar)
    """
    w1, b1, w2, b2, w3, b3 = params
    hidden = w2.shape[0]
    hp = pl.cdiv(hidden, 128) * 128
    pad = hp - hidden

    w1x = jnp.pad(w1[:input_dim], ((0, 0), (0, pad))).astype(compute_dtype)
    w1a = jnp.pad(w1[input_dim:], ((0, 0), (0, pad))).astype(compute_dtype)
    b12 = jnp.pad(jnp.stack([b1, b2], axis=0),
                  ((0, 0), (0, pad))).astype(jnp.float32)
    w2c = jnp.pad(w2, ((0, pad), (0, pad))).astype(compute_dtype)
    w3_row = jnp.pad(jnp.reshape(w3, (1, -1)),
                     ((0, 0), (0, pad))).astype(jnp.float32)
    b3v = jnp.reshape(b3, (1,)).astype(jnp.float32)
    return w1x, w1a, b12, w2c, w3_row, b3v


# ---------------------------------------------------------------------------
# Tiling / spec helpers
# ---------------------------------------------------------------------------

_MIN_TILE = 16    # bf16 sublane packing of the matmul LHS
_MAX_TILE = 512   # amortize the ~0.35us/step grid overhead


def _tile_plan(batch):
    """Return (tm, padded_batch): largest power-of-two tile <= _MAX_TILE that
    still yields >= 2 grid steps when the batch allows it (v7x: both TCs)."""
    if batch <= _MIN_TILE:
        return _MIN_TILE, _MIN_TILE
    cap = min(_MAX_TILE, pl.cdiv(batch, 2))
    tm = _MIN_TILE
    while tm * 2 <= cap:
        tm *= 2
    return tm, pl.cdiv(batch, tm) * tm


def _pad_rows(x, padded_rows):
    rows = x.shape[0]
    if rows == padded_rows:
        return x
    return jnp.pad(x, ((0, padded_rows - rows), (0, 0)))


def _row_spec(tm, cols):
    return pl.BlockSpec((tm, cols), lambda i: (i, 0))


def _const_spec(shape):
    # Weights/biases: same block every grid step -> stay resident in VMEM.
    return pl.BlockSpec(shape, lambda i: (0,) * len(shape))


_SMEM_SPEC = pl.BlockSpec(memory_space=pltpu.MemorySpace.SMEM)


def _nbytes(*arrays):
    return sum(a.size * a.dtype.itemsize for a in arrays)


def _compiler_params(weight_bytes, act_tile_bytes):
    # Double-buffered weights + activation tiles + headroom; only raise the
    # scoped-VMEM limit when we'd exceed the conservative 16 MiB default
    # (large hidden sizes, notably on v5e).
    need = 2 * (weight_bytes + act_tile_bytes) + (4 << 20)
    vmem_limit = min(need, 100 << 20) if need > (16 << 20) else None
    return pltpu.CompilerParams(dimension_semantics=("parallel",),
                                vmem_limit_bytes=vmem_limit)


# ---------------------------------------------------------------------------
# Wrappers
# ---------------------------------------------------------------------------

def soft_q_forward(x, a, packed_params):
    """x: [B, input_dim] f32, a: [B, action_dim] f32 -> q: [B, 1] f32.

    packed_params must come from pack_params() (packed once, out of hot path).
    """
    B, input_dim = x.shape
    action_dim = a.shape[1]
    w1x, w1a, b12, w2, w3_row, b3 = packed_params

    tm, bp = _tile_plan(B)
    xp = _pad_rows(x, bp)
    ap = _pad_rows(a, bp)
    grid = (bp // tm,)

    in_specs = [
        _row_spec(tm, input_dim),      # x (f32; cast to bf16 in-kernel)
        _row_spec(tm, action_dim),     # a
        _const_spec(w1x.shape),        # w1x
        _const_spec(w1a.shape),        # w1a
        _const_spec(b12.shape),        # stacked fc1/fc2 biases
        _const_spec(w2.shape),         # w2
        _const_spec(w3_row.shape),     # fc3 weight row (VPU path)
        _SMEM_SPEC,                    # fc3 bias scalar
    ]

    hp = w2.shape[0]
    act_bytes = tm * (input_dim + action_dim) * 4 + 2 * tm * hp * 4
    cp = _compiler_params(_nbytes(w1x, w1a, b12, w2, w3_row), act_bytes)

    out = pl.pallas_call(
        soft_q_kernel,
        out_shape=jax.ShapeDtypeStruct((bp, 1), jnp.float32),
        grid=grid,
        in_specs=in_specs,
        out_specs=_row_spec(tm, 1),
        compiler_params=cp,
    )(xp, ap, w1x, w1a, b12, w2, w3_row, b3)
    return out if bp == B else out[:B]


def twin_soft_q_forward(x, a, packed_params1, packed_params2):
    """Fused SAC twin critics -> (q1, q2), each [B, 1] f32.

    One launch, shared x/a DMA, single (tm, 2) output block per grid step.
    """
    B, input_dim = x.shape
    action_dim = a.shape[1]

    tm, bp = _tile_plan(B)
    xp = _pad_rows(x, bp)
    ap = _pad_rows(a, bp)
    grid = (bp // tm,)

    def head_specs(p):
        w1x, w1a, b12, w2, w3_row, _ = p
        return [_const_spec(w1x.shape), _const_spec(w1a.shape),
                _const_spec(b12.shape), _const_spec(w2.shape),
                _const_spec(w3_row.shape), _SMEM_SPEC]

    in_specs = ([_row_spec(tm, input_dim), _row_spec(tm, action_dim)]
                + head_specs(packed_params1) + head_specs(packed_params2))

    hp = packed_params1[3].shape[0]
    act_bytes = tm * (input_dim + action_dim) * 4 + 2 * tm * hp * 4
    weight_bytes = (_nbytes(*packed_params1[:5]) + _nbytes(*packed_params2[:5]))
    cp = _compiler_params(weight_bytes, act_bytes)

    out = pl.pallas_call(
        twin_soft_q_kernel,
        out_shape=jax.ShapeDtypeStruct((bp, 2), jnp.float32),
        grid=grid,
        in_specs=in_specs,
        out_specs=_row_spec(tm, 2),
        compiler_params=cp,
    )(xp, ap, *packed_params1, *packed_params2)
    return out[:B, 0:1], out[:B, 1:2]


# ---------------------------------------------------------------------------
# References
# ---------------------------------------------------------------------------

def soft_q_reference_matched(x, a, params, *, compute_dtype=jnp.bfloat16):
    """Reference with the same bf16 matmul casts as the kernel (tight check)."""
    w1, b1, w2, b2, w3, b3 = params
    input_dim = x.shape[1]
    xc = x.astype(compute_dtype)
    ac = a.astype(compute_dtype)
    h1 = (jnp.dot(xc, w1[:input_dim].astype(compute_dtype),
                  preferred_element_type=jnp.float32)
          + jnp.dot(ac, w1[input_dim:].astype(compute_dtype),
                    preferred_element_type=jnp.float32)
          + b1[None, :])
    h1 = jnp.maximum(h1, 0.0)
    h2 = (jnp.dot(h1.astype(compute_dtype), w2.astype(compute_dtype),
                  preferred_element_type=jnp.float32) + b2[None, :])
    h2 = jnp.maximum(h2, 0.0)
    return jnp.sum(h2 * w3[:, 0][None, :], axis=-1, keepdims=True) + b3


def soft_q_reference_f32(x, a, params):
    """Pure-f32 reference of the PyTorch module (loose check vs bf16 MXU)."""
    w1, b1, w2, b2, w3, b3 = params
    xa = jnp.concatenate([x, a], axis=1)
    h1 = jnp.maximum(xa @ w1 + b1, 0.0)
    h2 = jnp.maximum(h1 @ w2 + b2, 0.0)
    return h2 @ w3 + b3


# ---------------------------------------------------------------------------
# Demo / self-check
# ---------------------------------------------------------------------------

if __name__ == "__main__":
    # Small shapes consistent with the module: batch=8, obs=16, act=4, hidden=32
    B, input_dim, action_dim, hidden_dim = 8, 16, 4, 32

    key = jax.random.PRNGKey(0)
    kx, ka, kp1, kp2 = jax.random.split(key, 4)

    x = jax.random.normal(kx, (B, input_dim), jnp.float32)
    a = jax.random.normal(ka, (B, action_dim), jnp.float32)
    params1 = init_soft_q_params(kp1, input_dim, action_dim, hidden_dim)
    params2 = init_soft_q_params(kp2, input_dim, action_dim, hidden_dim)

    # Pack ONCE (out of the per-forward hot path).
    packed1 = pack_params(params1, input_dim)
    packed2 = pack_params(params2, input_dim)
    jax.block_until_ready((packed1, packed2))

    # Single critic (forward of the PyTorch module).
    q = soft_q_forward(x, a, packed1)
    jax.block_until_ready(q)
    assert q.shape == (B, 1)
    q_ref_m = soft_q_reference_matched(x, a, params1)
    q_ref_f = soft_q_reference_f32(x, a, params1)
    assert jnp.allclose(q, q_ref_m, atol=1e-4, rtol=1e-4), float(
        jnp.max(jnp.abs(q - q_ref_m)))
    assert jnp.allclose(q, q_ref_f, atol=3e-2, rtol=3e-2), float(
        jnp.max(jnp.abs(q - q_ref_f)))

    # Fused twin critics (how SAC actually evaluates Q1/Q2): one launch.
    q1, q2 = twin_soft_q_forward(x, a, packed1, packed2)
    jax.block_until_ready((q1, q2))
    assert jnp.allclose(q1, soft_q_reference_matched(x, a, params1),
                        atol=1e-4, rtol=1e-4)
    assert jnp.allclose(q2, soft_q_reference_matched(x, a, params2),
                        atol=1e-4, rtol=1e-4)

    print("KERNEL_OK")
</pallas_src>

<mosaic_0001>
module attributes {stable_mosaic.version = 11 : i64} {
  func.func @soft_q_kernel(%arg0: i32, %arg1: memref<16x16xf32, #tpu.memory_space<vmem>>, %arg2: memref<16x4xf32, #tpu.memory_space<vmem>>, %arg3: memref<16x128xbf16, #tpu.memory_space<vmem>>, %arg4: memref<4x128xbf16, #tpu.memory_space<vmem>>, %arg5: memref<2x128xf32, #tpu.memory_space<vmem>>, %arg6: memref<128x128xbf16, #tpu.memory_space<vmem>>, %arg7: memref<1x128xf32, #tpu.memory_space<vmem>>, %arg8: memref<1xf32, #tpu.memory_space<smem>>, %arg9: memref<16x1xf32, #tpu.memory_space<vmem>>) attributes {dimension_semantics = [#tpu.dimension_semantics<parallel>], iteration_bounds = array<i64: 1>, scalar_prefetch = 0 : i64, scratch_operands = 0 : i64, tpu.core_type = #tpu.core_type<tc>, window_params = [{transform_indices = @transform_0, window_bounds = array<i64: 16, 16>}, {transform_indices = @transform_1, window_bounds = array<i64: 16, 4>}, {pipeline_mode = #tpu.pipeline_mode<synchronous>, transform_indices = @transform_2, window_bounds = array<i64: 16, 128>}, {pipeline_mode = #tpu.pipeline_mode<synchronous>, transform_indices = @transform_3, window_bounds = array<i64: 4, 128>}, {pipeline_mode = #tpu.pipeline_mode<synchronous>, transform_indices = @transform_4, window_bounds = array<i64: 2, 128>}, {pipeline_mode = #tpu.pipeline_mode<synchronous>, transform_indices = @transform_5, window_bounds = array<i64: 128, 128>}, {pipeline_mode = #tpu.pipeline_mode<synchronous>, transform_indices = @transform_6, window_bounds = array<i64: 1, 128>}, {transform_indices = @transform_7, window_bounds = array<i64: 1>}, {transform_indices = @transform_8, window_bounds = array<i64: 16, 1>}]} {
    %c0 = arith.constant 0 : index
    %c0_0 = arith.constant 0 : index
    %0 = vector.load %arg1[%c0, %c0_0] : memref<16x16xf32, #tpu.memory_space<vmem>>, vector<16x16xf32>
    %1 = arith.truncf %0 : vector<16x16xf32> to vector<16x16xbf16>
    %c0_1 = arith.constant 0 : index
    %c0_2 = arith.constant 0 : index
    %2 = vector.load %arg2[%c0_1, %c0_2] : memref<16x4xf32, #tpu.memory_space<vmem>>, vector<16x4xf32>
    %3 = arith.truncf %2 : vector<16x4xf32> to vector<16x4xbf16>
    %c0_3 = arith.constant 0 : index
    %c0_4 = arith.constant 0 : index
    %4 = vector.load %arg3[%c0_3, %c0_4] : memref<16x128xbf16, #tpu.memory_space<vmem>>, vector<16x128xbf16>
    %cst = arith.constant dense<0.000000e+00> : vector<16x128xf32>
    %5 = tpu.matmul %1, %4, %cst {dimension_numbers = #tpu.dot_dimension_numbers<[1], [0], [0], [1], [0, 0, 1, 1], [], []>} : vector<16x16xbf16>, vector<16x128xbf16>, vector<16x128xf32> -> vector<16x128xf32>
    %c0_5 = arith.constant 0 : index
    %c0_6 = arith.constant 0 : index
    %6 = vector.load %arg4[%c0_5, %c0_6] : memref<4x128xbf16, #tpu.memory_space<vmem>>, vector<4x128xbf16>
    %cst_7 = arith.constant dense<0.000000e+00> : vector<16x128xf32>
    %7 = tpu.matmul %3, %6, %cst_7 {dimension_numbers = #tpu.dot_dimension_numbers<[1], [0], [0], [1], [0, 0, 1, 1], [], []>} : vector<16x4xbf16>, vector<4x128xbf16>, vector<16x128xf32> -> vector<16x128xf32>
    %8 = arith.addf %5, %7 : vector<16x128xf32>
    %c0_8 = arith.constant 0 : index
    %c0_9 = arith.constant 0 : index
    %9 = vector.load %arg5[%c0_8, %c0_9] : memref<2x128xf32, #tpu.memory_space<vmem>>, vector<1x128xf32>
    %10 = vector.broadcast %9 : vector<1x128xf32> to vector<16x128xf32>
    %11 = arith.addf %8, %10 : vector<16x128xf32>
    %cst_10 = arith.constant 0.000000e+00 : f32
    %12 = vector.broadcast %cst_10 : f32 to vector<16x128xf32>
    %13 = arith.maximumf %11, %12 : vector<16x128xf32>
    %14 = arith.truncf %13 : vector<16x128xf32> to vector<16x128xbf16>
    %c0_11 = arith.constant 0 : index
    %c0_12 = arith.constant 0 : index
    %15 = vector.load %arg6[%c0_11, %c0_12] : memref<128x128xbf16, #tpu.memory_space<vmem>>, vector<128x128xbf16>
    %cst_13 = arith.constant dense<0.000000e+00> : vector<16x128xf32>
    %16 = tpu.matmul %14, %15, %cst_13 {dimension_numbers = #tpu.dot_dimension_numbers<[1], [0], [0], [1], [0, 0, 1, 1], [], []>} : vector<16x128xbf16>, vector<128x128xbf16>, vector<16x128xf32> -> vector<16x128xf32>
    %c1 = arith.constant 1 : index
    %c0_14 = arith.constant 0 : index
    %17 = vector.load %arg5[%c1, %c0_14] : memref<2x128xf32, #tpu.memory_space<vmem>>, vector<1x128xf32>
    %18 = vector.broadcast %17 : vector<1x128xf32> to vector<16x128xf32>
    %19 = arith.addf %16, %18 : vector<16x128xf32>
    %cst_15 = arith.constant 0.000000e+00 : f32
    %20 = vector.broadcast %cst_15 : f32 to vector<16x128xf32>
    %21 = arith.maximumf %19, %20 : vector<16x128xf32>
    %c0_16 = arith.constant 0 : index
    %c0_17 = arith.constant 0 : index
    %22 = vector.load %arg7[%c0_16, %c0_17] : memref<1x128xf32, #tpu.memory_space<vmem>>, vector<1x128xf32>
    %23 = vector.broadcast %22 : vector<1x128xf32> to vector<16x128xf32>
    %24 = arith.mulf %21, %23 : vector<16x128xf32>
    %cst_18 = arith.constant dense<0.000000e+00> : vector<16xf32>
    %25 = vector.multi_reduction <add>, %24, %cst_18 [1] : vector<16x128xf32> to vector<16xf32>
    %26 = vector.shape_cast %25 : vector<16xf32> to vector<16x1xf32>
    %c0_19 = arith.constant 0 : index
    %27 = memref.load %arg8[%c0_19] : memref<1xf32, #tpu.memory_space<smem>>
    %28 = vector.broadcast %27 : f32 to vector<16x1xf32>
    %29 = arith.addf %26, %28 : vector<16x1xf32>
    %c0_20 = arith.constant 0 : index
    %c0_21 = arith.constant 0 : index
    %30 = vector.load %arg9[%c0_20, %c0_21] : memref<16x1xf32, #tpu.memory_space<vmem>>, vector<16x1xf32>
    tpu.vector_store %arg9[%c0_20, %c0_21], %29 {strides = array<i32>} : memref<16x1xf32, #tpu.memory_space<vmem>>, vector<16x1xf32>,
    return
  }
  func.func @transform_0(%arg0: i32) -> (i32, i32) {
    %c0_i32 = arith.constant 0 : i32
    %c0_i32_0 = arith.constant 0 : i32
    return %arg0, %c0_i32 : i32, i32
  }
  func.func @transform_1(%arg0: i32) -> (i32, i32) {
    %c0_i32 = arith.constant 0 : i32
    %c0_i32_0 = arith.constant 0 : i32
    return %arg0, %c0_i32 : i32, i32
  }
  func.func @transform_2(%arg0: i32) -> (i32, i32) {
    %c0_i32 = arith.constant 0 : i32
    %c0_i32_0 = arith.constant 0 : i32
    %c0_i32_1 = arith.constant 0 : i32
    return %c0_i32, %c0_i32_0 : i32, i32
  }
  func.func @transform_3(%arg0: i32) -> (i32, i32) {
    %c0_i32 = arith.constant 0 : i32
    %c0_i32_0 = arith.constant 0 : i32
    %c0_i32_1 = arith.constant 0 : i32
    return %c0_i32, %c0_i32_0 : i32, i32
  }
  func.func @transform_4(%arg0: i32) -> (i32, i32) {
    %c0_i32 = arith.constant 0 : i32
    %c0_i32_0 = arith.constant 0 : i32
    %c0_i32_1 = arith.constant 0 : i32
    return %c0_i32, %c0_i32_0 : i32, i32
  }
  func.func @transform_5(%arg0: i32) -> (i32, i32) {
    %c0_i32 = arith.constant 0 : i32
    %c0_i32_0 = arith.constant 0 : i32
    %c0_i32_1 = arith.constant 0 : i32
    return %c0_i32, %c0_i32_0 : i32, i32
  }
  func.func @transform_6(%arg0: i32) -> (i32, i32) {
    %c0_i32 = arith.constant 0 : i32
    %c0_i32_0 = arith.constant 0 : i32
    %c0_i32_1 = arith.constant 0 : i32
    return %c0_i32, %c0_i32_0 : i32, i32
  }
  func.func @transform_7(%arg0: i32) -> i32 {
    %c0_i32 = arith.constant 0 : i32
    %c0_i32_0 = arith.constant 0 : i32
    return %c0_i32 : i32
  }
  func.func @transform_8(%arg0: i32) -> (i32, i32) {
    %c0_i32 = arith.constant 0 : i32
    %c0_i32_0 = arith.constant 0 : i32
    return %arg0, %c0_i32 : i32, i32
  }
}

</mosaic_0001>

<bundles_post_ra>
// kernel: tpu_custom_call.1
= control target key start
LH: loop header
LB: loop body
LE: loop exit
PB: predicated region body
PF: predicated region fallthrough
CT: control target
= control target key end

     0   :  { %14 = vsyncpa [#allocation4], 0  ;;  %s396_s27 = smov [#allocation3]   ;;  %s488_s0 = inlined_call_operand.vmem [shape: f32[16,16], index: 0, kind: input, shape index: {}]   ;;  %s489_s1 = inlined_call_operand.vmem [shape: f32[16,4], index: 1, kind: input, shape index: {}]   ;;  %s490_s2 = inlined_call_operand.vmem [shape: bf16[16,128], index: 2, kind: input, shape index: {}]   ;;  %s491_s3 = inlined_call_operand.vmem [shape: bf16[4,128], index: 3, kind: input, shape index: {}]   ;;  %s492_s4 = inlined_call_operand.vmem [shape: f32[2,128], index: 4, kind: input, shape index: {}]   ;;  %s493_s5 = inlined_call_operand.hbm [shape: bf16[128,128], index: 5, kind: input, shape index: {}]   ;;  %s494_s6 = inlined_call_operand.vmem [shape: f32[1,128], index: 6, kind: input, shape index: {}]   ;;  %s495_s7 = inlined_call_operand.<no memory space> [shape: f32[1], index: 7, kind: input, shape index: {}]   ;;  %s496_s8 = inlined_call_operand.vmem [shape: f32[16,1], index: 8, kind: output, shape index: {}]  }
   0x1   :  { %s30_s28 = sshll.u32 %s396_s27, 4  ;;  %s31_s28 = int_to_ptr.vmem [resolvable:$true] %s30_s28 }
   0x2   :  { %s382_s29 = scalar_lea.vmem %s31_s28, 1024  ;;  %p387_p1 = scmp.lt.s32.totalorder %s31_s28, %s31_s28 }
   0x3   :  { %p383_p0 = scmp.ne.s32.totalorder %s31_s28, %s382_s29  ;;  %p388_p2 = scmp.lt.s32.totalorder %s382_s29, %s382_s29 }
   0x5   :  { %p389_p3 = por %p388_p2, %p387_p1 }
   0x7   :  { %p390_p4 = pnand %p389_p3, %p383_p0 }
   0x9   :  { %393 = shalt.err (!%p390_p4)
}
   0xa   :  { %s397_s30 = smov 64   ;;  %s398_s9 = smov 4  }
   0xb   :  { %36 = dma.hbm_to_vmem [thread:$0]  %s493_s5, 1024, %s31_s28, [#allocation4], %s397_s30, %s397_s30, %s398_s9  }
   0xc   :  { %394 = dma.done.wait [#allocation4], 1024  }
   0xd   :  { %395 = vsyncadd [#allocation4], 4294966272  ;;  %v399_v0 = vmov 0.0   ;;  %vm400_vm0 = vmmov 0   ;;  %vm58_vm1 = vcmask 1041408   ;;  %v48_v2 = vld [vmem:[%s489_s1] sm:$0xff]  ;;  %v290_v46 = vstv %s495_s7 }
   0xe   :  { %328 = vmatprep.subr.bf16.mxu1 %v399_v0  ;;  %330 = vmatprep.mubr.msk.bf16.mxu1 %vm400_vm0, %v399_v0  ;;  %v53_v1 = vld [vmem:[%s491_s3] sm:$0x3]  ;;  %v49_v3 = vld [vmem:[%s489_s1 + $0x8] sm:$0xff]  ;;  %vm54_vm2 = vcmask 31744   ;;  %v366_v7 = vld [vmem:[#allocation3 + $0x38] sm:$0xff]   ;;  %vm109_vm3 = vcmask 130048  }
   0xf   :  { %340 = vmatprep.subr.bf16.mxu0 %v399_v0  ;;  %356 = vmatprep.mubr.msk.bf16.mxu0 %vm400_vm0, %v399_v0  ;;  %v60_v4 = vsel %vm58_vm1, %v53_v1, 0  ;;  %v50_v5 = vpack.c.bf16 %v49_v3, %v48_v2  ;;  %v365_v6 = vld [vmem:[%s490_s2] sm:$0xff]   ;;  %v46_v9 = vld [vmem:[%s488_s0 + $0x8] sm:$0xff]  ;;  %v367_v10 = vld [vmem:[#allocation3 + $0x30] sm:$0xff]   ;;  %vm293_vm4 = vcmask 7168  }
  0x10   :  { %329 = vmatpush3.bf16.msra.mxu1 %v60_v4  ;;  %v45_v8 = vld [vmem:[%s488_s0] sm:$0xff]  ;;  %341 = vmatpush3.bf16.msra.mxu0 %v366_v7  ;;  %v368_v12 = vld [vmem:[#allocation3 + $0x28] sm:$0xff]   ;;  %v370_v14 = vld [vmem:[#allocation3 + $0x18] sm:$0xff]  }
  0x11   :  { %334 = vmatprep.subr.bf16.mxu1 %v399_v0  ;;  %342 = vmatprep.subr.bf16.mxu0 %v399_v0  ;;  %v47_v11 = vpack.c.bf16 %v46_v9, %v45_v8  ;;  %v369_v13 = vld [vmem:[#allocation3 + $0x20] sm:$0xff]   ;;  %v371_v15 = vld [vmem:[#allocation3 + $0x10] sm:$0xff]   ;;  %v372_v16 = vld [vmem:[#allocation3 + $0x8] sm:$0xff]  }
  0x12   :  { %v373_v17 = vld [vmem:[#allocation3] sm:$0xff]  }
  0x13   :  { %331 = vmatmul.mubr.msk.bf16.vlgmr.msra.gmra.mxu1 %vm54_vm2, %v50_v5  ;;  %v304_v24 = vld [vmem:[%s492_s4] ss:$0 sm:$0xff]  ;;  %v305_v34 = vld [vmem:[%s492_s4 + $0x1] ss:$0 sm:$0xff] }
  0x14   :  { %335 = vmatpush3.bf16.msra.mxu1 %v365_v6  ;;  %336 = vmatprep.mubr.msk.bf16.mxu1 %vm400_vm0, %v399_v0  ;;  %v314_v38 = vld [vmem:[%s494_s6] ss:$0 sm:$0xff] }
  0x15   :  { %343 = vmatpush3.bf16.msra.mxu0 %v367_v10 }
  0x16   :  { %344 = vmatprep.subr.bf16.mxu0 %v399_v0 }
  0x19   :  { %345 = vmatpush3.bf16.msra.mxu0 %v368_v12 }
  0x1a   :  { %346 = vmatprep.subr.bf16.mxu0 %v399_v0 }
  0x1b   :  { %337 = vmatmul.mubr.msk.bf16.vlgmr.msra.gmra.mxu1 %vm109_vm3, %v47_v11 }
  0x1d   :  { %347 = vmatpush3.bf16.msra.mxu0 %v369_v13 }
  0x1e   :  { %348 = vmatprep.subr.bf16.mxu0 %v399_v0 }
  0x21   :  { %349 = vmatpush3.bf16.msra.mxu0 %v370_v14 }
  0x22   :  { %350 = vmatprep.subr.bf16.mxu0 %v399_v0 }
  0x25   :  { %351 = vmatpush3.bf16.msra.mxu0 %v371_v15 }
  0x26   :  { %352 = vmatprep.subr.bf16.mxu0 %v399_v0 }
  0x29   :  { %353 = vmatpush3.bf16.msra.mxu0 %v372_v16 }
  0x2a   :  { %354 = vmatprep.subr.bf16.mxu0 %v399_v0 }
  0x2d   :  { %355 = vmatpush3.bf16.msra.mxu0 %v373_v17 }
  0xd3   :  { %v96_v18 = vpop.f32.mrf.mxu1 }
  0xd5   :  { %v332_v19 = vpop.f32.mrf.mxu1 }
  0xd7   :  { %v99_v20 = vpop.f32.mrf.mxu1 }
  0xd9   :  { %v333_v21 = vpop.f32.mrf.mxu1 }
  0xdb   :  { %v147_v22 = vpop.f32.mrf.mxu1 }
  0xdc   :  { %v148_v23 = vadd.f32 %v147_v22, %v96_v18 }
  0xdd   :  { %v338_v25 = vpop.f32.mrf.mxu1 }
  0xde   :  { %v159_v27 = vadd.f32 %v304_v24, %v148_v23 }
  0xdf   :  { %v150_v26 = vpop.f32.mrf.mxu1 }
  0xe0   :  { %v151_v28 = vadd.f32 %v150_v26, %v99_v20  ;;  %v161_v31 = vmax.f32 %v159_v27, 0.0 }
  0xe1   :  { %v339_v29 = vpop.f32.mrf.mxu1 }
  0xe2   :  { %v160_v30 = vadd.f32 %v304_v24, %v151_v28 }
  0xe4   :  { %v162_v32 = vmax.f32 %v160_v30, 0.0 }
  0xe6   :  { %v163_v33 = vpack.c.bf16 %v162_v32, %v161_v31 }
  0xe8   :  { %357 = vmatmul.mubr.bf16.vlgmr.msra.gmra.mxu0 %v163_v33 }
 0x1a8   :  { %v267_v35 = vpop.f32.mrf.mxu0 }
 0x1a9   :  { %v268_v36 = vadd.f32 %v305_v34, %v267_v35 }
 0x1aa   :  { %v358_v37 = vpop.f32.mrf.mxu0 }
 0x1ab   :  { %v274_v39 = vmax.f32 %v268_v36, 0.0 }
 0x1ac   :  { %v270_v40 = vpop.f32.mrf.mxu0 }
 0x1ad   :  { %v271_v41 = vadd.f32 %v305_v34, %v270_v40  ;;  %v283_v42 = vmul.f32 %v314_v38, %v274_v39 }
 0x1ae   :  { %v359_v43 = vpop.f32.mrf.mxu0 }
 0x1af   :  { %v275_v44 = vmax.f32 %v271_v41, 0.0  ;;  %285 = vadd.xlane.f32.xlu0 %v283_v42 }
 0x1b1   :  { %v284_v45 = vmul.f32 %v314_v38, %v275_v44 }
 0x1b3   :  { %287 = vadd.xlane.f32.xlu0 %v284_v45 }
 0x238   :  { %v286_v47 = vpop.xlane.xlu0 %285 }
 0x239   :  { %v291_v48 = vadd.f32 %v290_v46, %v286_v47 }
 0x23b   :  { %294 = vst.msk [vmem:[%s496_s8] sm:$0xff] %vm293_vm4, %v291_v48 }
 0x23c   :  { %v288_v49 = vpop.xlane.xlu0 %287 }
 0x23d   :  { %v292_v50 = vadd.f32 %v290_v46, %v288_v49 }
 0x23f   :  { %295 = vst.msk [vmem:[%s496_s8 + $0x8] sm:$0xff] %vm293_vm4, %v292_v50 }
 0x240   :  { %300 = vsyncpa [#allocation4], 1 }

</bundles_post_ra>
